<compile_context>
chip_gen: v7x
topology: tpu7x:2x2x1
jax: 0.10.0
libtpu: 0.0.40
codegen_flags: <defaults>
</compile_context>

<pallas_src>
import functools

import jax
import jax.numpy as jnp
from jax import lax
from jax.experimental import pallas as pl
from jax.experimental.pallas import tpu as pltpu

# Population constant `N` referenced as a global in the original script.
N_POP = 1000.0

IN_DIM = 5            # state dimension (compartments)
HID = 20              # hidden width of each parameter net
HID_PAD = 24          # hidden width padded to a multiple of 8 sublanes
N_NETS = 4            # beta, cita1, cita2, ep
NH = N_NETS * HID_PAD # 96 stacked (padded) hidden units

MAX_LANE_TILE_RHS = 512    # measured tile curve: 512-wide ~ 85% of roofline
MAX_LANE_TILE_EULER = 256  # keep the fused time-loop working set vreg-friendly

# SMEM scalar layout: [gamma, alpha, N, 1/N, b2_beta, b2_cita1, b2_cita2, b2_ep]
P_GAMMA, P_ALPHA, P_N, P_INVN, P_B2 = 0, 1, 2, 3, 4
N_SCALARS = P_B2 + N_NETS


def _elu(x):
    # PyTorch nn.ELU(alpha=1): x if x > 0 else exp(x) - 1.
    # min() keeps exp() off the overflow path for large positives.
    return jnp.where(x > 0, x, jnp.exp(jnp.minimum(x, 0.0)) - 1.0)


def _unpack_scalars(params_ref):
    gamma = jnp.abs(params_ref[P_GAMMA])
    alpha = jnp.abs(params_ref[P_ALPHA])
    n_pop = params_ref[P_N]
    inv_n = params_ref[P_INVN]
    b2 = tuple(params_ref[P_B2 + i] for i in range(N_NETS))
    return gamma, alpha, n_pop, inv_n, b2


def _rhs_rows(y_rows, wb1, w2col, gamma, alpha, n_pop, inv_n, b2):
    """dY/dt for one lane-major batch tile.

    y_rows : 5 arrays of shape (1, TB)  (one compartment row, batch on lanes)
    wb1    : (96, 6)  stacked [W1 | b1], 24 rows per net, rows 20..23 are zero
    w2col  : (96, 1)  stacked second-layer weights (pad rows zero)
    Returns 5 arrays of shape (1, TB).
    """
    nets = []
    for i in range(N_NETS):
        r0 = i * HID_PAD
        wb1_i = wb1[r0:r0 + HID_PAD, :]                      # (24, 6)
        # Layer 1: 5 VPU broadcast-FMAs onto a (24, TB) slab.  No MXU (K=5
        # would waste >95% of the systolic array).  Per-net processing keeps
        # the live hidden slab at 24 rows so wide lane tiles do not spill.
        h = wb1_i[:, 0:1] * y_rows[0]
        for k in range(1, IN_DIM):
            h = h + wb1_i[:, k:k + 1] * y_rows[k]
        h = _elu(h + wb1_i[:, IN_DIM:IN_DIM + 1])            # + bias column
        # Layer 2: elementwise multiply + sublane (XLU) reduction, exact sigmoid
        # (exp on the EUP slot; exact reciprocal avoids the ~1e-3 error that the
        # ODE terms amplify).
        z = jnp.sum(h * w2col[r0:r0 + HID_PAD, :], axis=0, keepdims=True) + b2[i]
        nets.append(1.0 / (1.0 + jnp.exp(-z)))

    beta = nets[0]
    cita1 = nets[1] ** 2
    cita2 = nets[2] ** 2
    ep = nets[3] ** 2

    y0, y1, y2, y3, y4 = y_rows
    susceptible = n_pop - y0 - y1 - y2 - y3 - y4
    d0 = beta * susceptible * (y1 + y2) * inv_n - gamma * y0
    d1 = gamma * y0 - alpha * y1 - cita1 * y1
    d2 = alpha * y1 - cita2 * y2 - ep * y2
    d3 = cita1 * y1 + cita2 * y2
    d4 = ep * y2
    return d0, d1, d2, d3, d4


def odefunc_kernel(params_ref, y_ref, wb1_ref, w2_ref, out_ref):
    """Single RHS evaluation for one lane-major batch tile (module forward)."""
    gamma, alpha, n_pop, inv_n, b2 = _unpack_scalars(params_ref)
    # Hoist the compartment rows once per tile (views of the loaded slab).
    y_rows = tuple(y_ref[r:r + 1, :] for r in range(IN_DIM))
    d = _rhs_rows(y_rows, wb1_ref[...], w2_ref[...],
                  gamma, alpha, n_pop, inv_n, b2)
    for r in range(IN_DIM):
        out_ref[r:r + 1, :] = d[r]          # lane-dense full-row stores


def _make_euler_kernel(n_steps, dt):
    """n_steps explicit-Euler steps fused into one kernel: weights stay resident
    in VMEM/SMEM and the state never round-trips to HBM between RHS evals."""
    def kernel(params_ref, y_ref, wb1_ref, w2_ref, out_ref):
        gamma, alpha, n_pop, inv_n, b2 = _unpack_scalars(params_ref)
        wb1 = wb1_ref[...]
        w2 = w2_ref[...]
        rows0 = tuple(y_ref[r:r + 1, :] for r in range(IN_DIM))

        def step(_, rows):
            d = _rhs_rows(rows, wb1, w2, gamma, alpha, n_pop, inv_n, b2)
            return tuple(rows[r] + dt * d[r] for r in range(IN_DIM))

        rows_f = lax.fori_loop(0, n_steps, step, rows0)
        for r in range(IN_DIM):
            out_ref[r:r + 1, :] = rows_f[r]
    return kernel


def _pad_and_tile(b, max_tile):
    """Pick a lane tile (multiple of 128, capped) and a padded batch that is a
    multiple of it.  For b >= 256 the grid gets >= 2 steps so the "parallel"
    axis can shard across both TensorCores on v7x; wide tiles amortize the
    ~600-cycle per-grid-step pipeline overhead for large batches."""
    b128 = -(-b // 128) * 128
    if b128 <= 128:
        tile = 128
    else:
        tile = max(128, min(max_tile, (b128 // 2) // 128 * 128))
    b_pad = -(-b // tile) * tile
    return tile, b_pad


def _run_pallas(kernel, params, y_t_padded, wb1, w2col, tile, b_pad):
    return pl.pallas_call(
        kernel,
        out_shape=jax.ShapeDtypeStruct((IN_DIM, b_pad), jnp.float32),
        grid=(b_pad // tile,),
        in_specs=[
            pl.BlockSpec(memory_space=pltpu.MemorySpace.SMEM),   # scalars
            pl.BlockSpec((IN_DIM, tile), lambda i: (0, i)),      # states (lane-major)
            pl.BlockSpec((NH, IN_DIM + 1), lambda i: (0, 0)),    # [W1 | b1] (resident)
            pl.BlockSpec((NH, 1), lambda i: (0, 0)),             # W2 column (resident)
        ],
        out_specs=pl.BlockSpec((IN_DIM, tile), lambda i: (0, i)),
        compiler_params=pltpu.CompilerParams(
            dimension_semantics=("parallel",)),                  # v7x: both TCs
    )(params, y_t_padded, wb1, w2col)


@jax.jit
def odefunc_forward_lane_major(params, y_t, wb1, w2col):
    """dY/dt keeping the state in lane-major (5, B) layout end-to-end (no
    transpose/scatter plumbing; preferred entry point inside a solver loop)."""
    _, b = y_t.shape
    tile, b_pad = _pad_and_tile(b, MAX_LANE_TILE_RHS)
    y_p = jnp.pad(y_t, ((0, 0), (0, b_pad - b)))
    out = _run_pallas(odefunc_kernel, params, y_p, wb1, w2col, tile, b_pad)
    return out[:, :b]


@jax.jit
def odefunc_forward(params, y, wb1, w2col):
    """Module-contract forward: y of shape (..., 5) -> dY/dt of the same shape."""
    orig_shape = y.shape
    yb = y.reshape(-1, IN_DIM)
    out_t = odefunc_forward_lane_major(params, yb.T, wb1, w2col)
    return out_t.T.reshape(orig_shape)


@functools.partial(jax.jit, static_argnames=("n_steps", "dt"))
def odefunc_integrate_euler(params, y, wb1, w2col, *, n_steps, dt):
    """Explicit-Euler trajectory: n_steps fused RHS evaluations in ONE pallas_call."""
    orig_shape = y.shape
    yb = y.reshape(-1, IN_DIM)
    b = yb.shape[0]
    tile, b_pad = _pad_and_tile(b, MAX_LANE_TILE_EULER)
    y_p = jnp.pad(yb.T, ((0, 0), (0, b_pad - b)))
    out = _run_pallas(_make_euler_kernel(n_steps, dt),
                      params, y_p, wb1, w2col, tile, b_pad)
    return out[:, :b].T.reshape(orig_shape)


def init_params(key):
    """Replicates the module __init__.  Note: the PyTorch init loops over ALL
    Linear modules of each Sequential, so BOTH the layer-1 bias and the
    layer-2 bias receive the per-net constant (0.01 / -1.02 / -1.56 / -1.56)."""
    stds = [0.002, 0.01, 0.002, 0.002]           # beta, cita1, cita2, ep nets
    biases = [0.01, -1.02, -1.56, -1.56]

    keys = jax.random.split(key, 2 * N_NETS)
    wb1 = jnp.zeros((NH, IN_DIM + 1), jnp.float32)
    w2col = jnp.zeros((NH, 1), jnp.float32)
    b2_vals = []
    for i in range(N_NETS):
        # PyTorch Linear weight shapes: (20, 5) and (1, 20).
        w_a = jax.random.normal(keys[2 * i], (HID, IN_DIM), jnp.float32) * stds[i]
        w_b = jax.random.normal(keys[2 * i + 1], (1, HID), jnp.float32) * stds[i]
        r0 = i * HID_PAD
        wb1 = wb1.at[r0:r0 + HID, 0:IN_DIM].set(w_a)
        wb1 = wb1.at[r0:r0 + HID, IN_DIM].set(biases[i])     # layer-1 bias (const)
        w2col = w2col.at[r0:r0 + HID, 0].set(w_b[0])
        b2_vals.append(biases[i])                            # layer-2 bias (const)

    gamma = 0.15
    alpha = 0.15
    params = jnp.array([gamma, alpha, N_POP, 1.0 / N_POP] + b2_vals, jnp.float32)
    return params, wb1, w2col


def reference_forward(params, y, wb1, w2col):
    """Pure-JAX reference mirroring the PyTorch forward.  Layer math is written
    elementwise (no jnp.dot) so TPU default-matmul precision cannot skew the
    values the kernel is checked against."""
    gamma = jnp.abs(params[P_GAMMA])
    alpha = jnp.abs(params[P_ALPHA])
    n_pop = params[P_N]
    yb = y.reshape(-1, IN_DIM)                               # (B, 5)

    outs = []
    for i in range(N_NETS):
        r0 = i * HID_PAD
        w1_i = wb1[r0:r0 + HID, 0:IN_DIM]                    # (20, 5) torch layout
        b1_i = wb1[r0:r0 + HID, IN_DIM]                      # (20,)
        w2_i = w2col[r0:r0 + HID, 0]                         # (20,)
        b2_i = params[P_B2 + i]
        h = _elu(jnp.sum(yb[:, None, :] * w1_i[None, :, :], axis=-1) + b1_i)  # (B,20)
        outs.append(jax.nn.sigmoid(jnp.sum(h * w2_i, axis=-1) + b2_i))        # (B,)

    beta, c1, c2, ep = outs[0], outs[1] ** 2, outs[2] ** 2, outs[3] ** 2
    s = [yb[:, k] for k in range(IN_DIM)]
    sus = n_pop - s[0] - s[1] - s[2] - s[3] - s[4]
    out = jnp.stack([
        beta * sus * (s[1] + s[2]) / n_pop - gamma * s[0],
        gamma * s[0] - alpha * s[1] - c1 * s[1],
        alpha * s[1] - c2 * s[2] - ep * s[2],
        c1 * s[1] + c2 * s[2],
        ep * s[2],
    ], axis=-1)
    return out.reshape(y.shape)


def reference_integrate(params, y, wb1, w2col, n_steps, dt):
    def step(state, _):
        return state + dt * reference_forward(params, state, wb1, w2col), None
    yf, _ = lax.scan(step, y, None, length=n_steps)
    return yf


if __name__ == "__main__":
    key = jax.random.PRNGKey(0)
    k_param, k_y1, k_y2, k_y3 = jax.random.split(key, 4)

    params, wb1, w2col = init_params(k_param)

    # 1) Module-parity case: a single state of shape (1, 1, 5) (t unused by forward).
    y_single = jax.random.uniform(k_y1, (1, 1, IN_DIM), jnp.float32,
                                  minval=0.0, maxval=100.0)
    out_single = jax.block_until_ready(odefunc_forward(params, y_single, wb1, w2col))
    ref_single = reference_forward(params, y_single, wb1, w2col)
    assert out_single.shape == (1, 1, IN_DIM)
    assert jnp.allclose(out_single, ref_single, rtol=5e-3, atol=5e-3)

    # 2) Batched RHS: many independent states in one call (batch on the lane axis).
    y_batch = jax.random.uniform(k_y2, (16, IN_DIM), jnp.float32,
                                 minval=0.0, maxval=100.0)
    out_batch = jax.block_until_ready(odefunc_forward(params, y_batch, wb1, w2col))
    ref_batch = reference_forward(params, y_batch, wb1, w2col)
    assert out_batch.shape == (16, IN_DIM)
    assert jnp.allclose(out_batch, ref_batch, rtol=5e-3, atol=5e-3)

    # 3) Larger batch: exercises a multi-step "parallel" grid (>= 2 tiles, so both
    #    TensorCores on v7x) and the pad-to-tile path.
    y_big = jax.random.uniform(k_y3, (300, IN_DIM), jnp.float32,
                               minval=0.0, maxval=100.0)
    out_big = jax.block_until_ready(odefunc_forward(params, y_big, wb1, w2col))
    ref_big = reference_forward(params, y_big, wb1, w2col)
    assert out_big.shape == (300, IN_DIM)
    assert jnp.allclose(out_big, ref_big, rtol=5e-3, atol=5e-3)

    # 4) Lane-major entry point (no transpose plumbing) matches the standard one.
    out_lm = jax.block_until_ready(
        odefunc_forward_lane_major(params, y_batch.T, wb1, w2col))
    assert jnp.allclose(out_lm.T, out_batch, rtol=1e-6, atol=1e-6)

    # 5) Fused explicit-Euler trajectory: 16 RHS evaluations in a single pallas_call
    #    with weights resident in VMEM/SMEM (amortizes launch + DMA overhead).
    n_steps, dt = 16, 0.02
    out_traj = jax.block_until_ready(
        odefunc_integrate_euler(params, y_batch, wb1, w2col, n_steps=n_steps, dt=dt))
    ref_traj = reference_integrate(params, y_batch, wb1, w2col, n_steps, dt)
    assert out_traj.shape == (16, IN_DIM)
    assert jnp.allclose(out_traj, ref_traj, rtol=5e-3, atol=5e-2)

    print("KERNEL_OK")
</pallas_src>

<mosaic_0001>
module attributes {stable_mosaic.version = 11 : i64} {
  func.func @odefunc_kernel(%arg0: i32, %arg1: memref<8xf32, #tpu.memory_space<smem>>, %arg2: memref<5x128xf32, #tpu.memory_space<vmem>>, %arg3: memref<96x6xf32, #tpu.memory_space<vmem>>, %arg4: memref<96x1xf32, #tpu.memory_space<vmem>>, %arg5: memref<5x128xf32, #tpu.memory_space<vmem>>) attributes {dimension_semantics = [#tpu.dimension_semantics<parallel>], iteration_bounds = array<i64: 1>, scalar_prefetch = 0 : i64, scratch_operands = 0 : i64, tpu.core_type = #tpu.core_type<tc>, window_params = [{transform_indices = @transform_0, window_bounds = array<i64: 8>}, {transform_indices = @transform_1, window_bounds = array<i64: 5, 128>}, {pipeline_mode = #tpu.pipeline_mode<synchronous>, transform_indices = @transform_2, window_bounds = array<i64: 96, 6>}, {pipeline_mode = #tpu.pipeline_mode<synchronous>, transform_indices = @transform_3, window_bounds = array<i64: 96, 1>}, {transform_indices = @transform_4, window_bounds = array<i64: 5, 128>}]} {
    %c0 = arith.constant 0 : index
    %0 = memref.load %arg1[%c0] : memref<8xf32, #tpu.memory_space<smem>>
    %1 = math.absf %0 : f32
    %c1 = arith.constant 1 : index
    %2 = memref.load %arg1[%c1] : memref<8xf32, #tpu.memory_space<smem>>
    %3 = math.absf %2 : f32
    %c2 = arith.constant 2 : index
    %4 = memref.load %arg1[%c2] : memref<8xf32, #tpu.memory_space<smem>>
    %c3 = arith.constant 3 : index
    %5 = memref.load %arg1[%c3] : memref<8xf32, #tpu.memory_space<smem>>
    %c4 = arith.constant 4 : index
    %6 = memref.load %arg1[%c4] : memref<8xf32, #tpu.memory_space<smem>>
    %c5 = arith.constant 5 : index
    %7 = memref.load %arg1[%c5] : memref<8xf32, #tpu.memory_space<smem>>
    %c6 = arith.constant 6 : index
    %8 = memref.load %arg1[%c6] : memref<8xf32, #tpu.memory_space<smem>>
    %c7 = arith.constant 7 : index
    %9 = memref.load %arg1[%c7] : memref<8xf32, #tpu.memory_space<smem>>
    %c0_0 = arith.constant 0 : index
    %c0_1 = arith.constant 0 : index
    %10 = vector.load %arg2[%c0_0, %c0_1] : memref<5x128xf32, #tpu.memory_space<vmem>>, vector<1x128xf32>
    %c1_2 = arith.constant 1 : index
    %c0_3 = arith.constant 0 : index
    %11 = vector.load %arg2[%c1_2, %c0_3] : memref<5x128xf32, #tpu.memory_space<vmem>>, vector<1x128xf32>
    %c2_4 = arith.constant 2 : index
    %c0_5 = arith.constant 0 : index
    %12 = vector.load %arg2[%c2_4, %c0_5] : memref<5x128xf32, #tpu.memory_space<vmem>>, vector<1x128xf32>
    %c3_6 = arith.constant 3 : index
    %c0_7 = arith.constant 0 : index
    %13 = vector.load %arg2[%c3_6, %c0_7] : memref<5x128xf32, #tpu.memory_space<vmem>>, vector<1x128xf32>
    %c4_8 = arith.constant 4 : index
    %c0_9 = arith.constant 0 : index
    %14 = vector.load %arg2[%c4_8, %c0_9] : memref<5x128xf32, #tpu.memory_space<vmem>>, vector<1x128xf32>
    %c0_10 = arith.constant 0 : index
    %c0_11 = arith.constant 0 : index
    %15 = vector.load %arg3[%c0_10, %c0_11] : memref<96x6xf32, #tpu.memory_space<vmem>>, vector<96x6xf32>
    %c0_12 = arith.constant 0 : index
    %c0_13 = arith.constant 0 : index
    %16 = vector.load %arg4[%c0_12, %c0_13] : memref<96x1xf32, #tpu.memory_space<vmem>>, vector<96x1xf32>
    %17 = vector.extract_strided_slice %15 {offsets = [0, 0], sizes = [24, 6], strides = [1, 1]} : vector<96x6xf32> to vector<24x6xf32>
    %18 = vector.extract_strided_slice %17 {offsets = [0, 0], sizes = [24, 1], strides = [1, 1]} : vector<24x6xf32> to vector<24x1xf32>
    %19 = vector.broadcast %18 : vector<24x1xf32> to vector<24x128xf32>
    %20 = vector.broadcast %10 : vector<1x128xf32> to vector<24x128xf32>
    %21 = arith.mulf %19, %20 : vector<24x128xf32>
    %22 = vector.extract_strided_slice %17 {offsets = [0, 1], sizes = [24, 1], strides = [1, 1]} : vector<24x6xf32> to vector<24x1xf32>
    %23 = vector.broadcast %22 : vector<24x1xf32> to vector<24x128xf32>
    %24 = vector.broadcast %11 : vector<1x128xf32> to vector<24x128xf32>
    %25 = arith.mulf %23, %24 : vector<24x128xf32>
    %26 = arith.addf %21, %25 : vector<24x128xf32>
    %27 = vector.extract_strided_slice %17 {offsets = [0, 2], sizes = [24, 1], strides = [1, 1]} : vector<24x6xf32> to vector<24x1xf32>
    %28 = vector.broadcast %27 : vector<24x1xf32> to vector<24x128xf32>
    %29 = vector.broadcast %12 : vector<1x128xf32> to vector<24x128xf32>
    %30 = arith.mulf %28, %29 : vector<24x128xf32>
    %31 = arith.addf %26, %30 : vector<24x128xf32>
    %32 = vector.extract_strided_slice %17 {offsets = [0, 3], sizes = [24, 1], strides = [1, 1]} : vector<24x6xf32> to vector<24x1xf32>
    %33 = vector.broadcast %32 : vector<24x1xf32> to vector<24x128xf32>
    %34 = vector.broadcast %13 : vector<1x128xf32> to vector<24x128xf32>
    %35 = arith.mulf %33, %34 : vector<24x128xf32>
    %36 = arith.addf %31, %35 : vector<24x128xf32>
    %37 = vector.extract_strided_slice %17 {offsets = [0, 4], sizes = [24, 1], strides = [1, 1]} : vector<24x6xf32> to vector<24x1xf32>
    %38 = vector.broadcast %37 : vector<24x1xf32> to vector<24x128xf32>
    %39 = vector.broadcast %14 : vector<1x128xf32> to vector<24x128xf32>
    %40 = arith.mulf %38, %39 : vector<24x128xf32>
    %41 = arith.addf %36, %40 : vector<24x128xf32>
    %42 = vector.extract_strided_slice %17 {offsets = [0, 5], sizes = [24, 1], strides = [1, 1]} : vector<24x6xf32> to vector<24x1xf32>
    %43 = vector.broadcast %42 : vector<24x1xf32> to vector<24x128xf32>
    %44 = arith.addf %41, %43 : vector<24x128xf32>
    %cst = arith.constant 0.000000e+00 : f32
    %45 = vector.broadcast %cst : f32 to vector<24x128xf32>
    %46 = arith.cmpf ogt, %44, %45 : vector<24x128xf32>
    %cst_14 = arith.constant 0.000000e+00 : f32
    %47 = vector.broadcast %cst_14 : f32 to vector<24x128xf32>
    %48 = arith.minimumf %44, %47 : vector<24x128xf32>
    %49 = math.exp %48 : vector<24x128xf32>
    %cst_15 = arith.constant 1.000000e+00 : f32
    %50 = vector.broadcast %cst_15 : f32 to vector<24x128xf32>
    %51 = arith.subf %49, %50 : vector<24x128xf32>
    %52 = arith.select %46, %44, %51 : vector<24x128xi1>, vector<24x128xf32>
    %53 = vector.extract_strided_slice %16 {offsets = [0, 0], sizes = [24, 1], strides = [1, 1]} : vector<96x1xf32> to vector<24x1xf32>
    %54 = vector.broadcast %53 : vector<24x1xf32> to vector<24x128xf32>
    %55 = arith.mulf %52, %54 : vector<24x128xf32>
    %cst_16 = arith.constant dense<0.000000e+00> : vector<128xf32>
    %56 = vector.multi_reduction <add>, %55, %cst_16 [0] : vector<24x128xf32> to vector<128xf32>
    %57 = vector.shape_cast %56 : vector<128xf32> to vector<1x128xf32>
    %58 = vector.broadcast %6 : f32 to vector<1x128xf32>
    %59 = arith.addf %57, %58 : vector<1x128xf32>
    %cst_17 = arith.constant 0.000000e+00 : f32
    %60 = vector.broadcast %cst_17 : f32 to vector<1x128xf32>
    %61 = arith.subf %60, %59 : vector<1x128xf32>
    %62 = math.exp %61 : vector<1x128xf32>
    %cst_18 = arith.constant 1.000000e+00 : f32
    %63 = vector.broadcast %cst_18 : f32 to vector<1x128xf32>
    %64 = arith.addf %63, %62 : vector<1x128xf32>
    %cst_19 = arith.constant 1.000000e+00 : f32
    %65 = vector.broadcast %cst_19 : f32 to vector<1x128xf32>
    %66 = arith.divf %65, %64 : vector<1x128xf32>
    %67 = vector.extract_strided_slice %15 {offsets = [24, 0], sizes = [24, 6], strides = [1, 1]} : vector<96x6xf32> to vector<24x6xf32>
    %68 = vector.extract_strided_slice %67 {offsets = [0, 0], sizes = [24, 1], strides = [1, 1]} : vector<24x6xf32> to vector<24x1xf32>
    %69 = vector.broadcast %68 : vector<24x1xf32> to vector<24x128xf32>
    %70 = vector.broadcast %10 : vector<1x128xf32> to vector<24x128xf32>
    %71 = arith.mulf %69, %70 : vector<24x128xf32>
    %72 = vector.extract_strided_slice %67 {offsets = [0, 1], sizes = [24, 1], strides = [1, 1]} : vector<24x6xf32> to vector<24x1xf32>
    %73 = vector.broadcast %72 : vector<24x1xf32> to vector<24x128xf32>
    %74 = vector.broadcast %11 : vector<1x128xf32> to vector<24x128xf32>
    %75 = arith.mulf %73, %74 : vector<24x128xf32>
    %76 = arith.addf %71, %75 : vector<24x128xf32>
    %77 = vector.extract_strided_slice %67 {offsets = [0, 2], sizes = [24, 1], strides = [1, 1]} : vector<24x6xf32> to vector<24x1xf32>
    %78 = vector.broadcast %77 : vector<24x1xf32> to vector<24x128xf32>
    %79 = vector.broadcast %12 : vector<1x128xf32> to vector<24x128xf32>
    %80 = arith.mulf %78, %79 : vector<24x128xf32>
    %81 = arith.addf %76, %80 : vector<24x128xf32>
    %82 = vector.extract_strided_slice %67 {offsets = [0, 3], sizes = [24, 1], strides = [1, 1]} : vector<24x6xf32> to vector<24x1xf32>
    %83 = vector.broadcast %82 : vector<24x1xf32> to vector<24x128xf32>
    %84 = vector.broadcast %13 : vector<1x128xf32> to vector<24x128xf32>
    %85 = arith.mulf %83, %84 : vector<24x128xf32>
    %86 = arith.addf %81, %85 : vector<24x128xf32>
    %87 = vector.extract_strided_slice %67 {offsets = [0, 4], sizes = [24, 1], strides = [1, 1]} : vector<24x6xf32> to vector<24x1xf32>
    %88 = vector.broadcast %87 : vector<24x1xf32> to vector<24x128xf32>
    %89 = vector.broadcast %14 : vector<1x128xf32> to vector<24x128xf32>
    %90 = arith.mulf %88, %89 : vector<24x128xf32>
    %91 = arith.addf %86, %90 : vector<24x128xf32>
    %92 = vector.extract_strided_slice %67 {offsets = [0, 5], sizes = [24, 1], strides = [1, 1]} : vector<24x6xf32> to vector<24x1xf32>
    %93 = vector.broadcast %92 : vector<24x1xf32> to vector<24x128xf32>
    %94 = arith.addf %91, %93 : vector<24x128xf32>
    %cst_20 = arith.constant 0.000000e+00 : f32
    %95 = vector.broadcast %cst_20 : f32 to vector<24x128xf32>
    %96 = arith.cmpf ogt, %94, %95 : vector<24x128xf32>
    %cst_21 = arith.constant 0.000000e+00 : f32
    %97 = vector.broadcast %cst_21 : f32 to vector<24x128xf32>
    %98 = arith.minimumf %94, %97 : vector<24x128xf32>
    %99 = math.exp %98 : vector<24x128xf32>
    %cst_22 = arith.constant 1.000000e+00 : f32
    %100 = vector.broadcast %cst_22 : f32 to vector<24x128xf32>
    %101 = arith.subf %99, %100 : vector<24x128xf32>
    %102 = arith.select %96, %94, %101 : vector<24x128xi1>, vector<24x128xf32>
    %103 = vector.extract_strided_slice %16 {offsets = [24, 0], sizes = [24, 1], strides = [1, 1]} : vector<96x1xf32> to vector<24x1xf32>
    %104 = vector.broadcast %103 : vector<24x1xf32> to vector<24x128xf32>
    %105 = arith.mulf %102, %104 : vector<24x128xf32>
    %cst_23 = arith.constant dense<0.000000e+00> : vector<128xf32>
    %106 = vector.multi_reduction <add>, %105, %cst_23 [0] : vector<24x128xf32> to vector<128xf32>
    %107 = vector.shape_cast %106 : vector<128xf32> to vector<1x128xf32>
    %108 = vector.broadcast %7 : f32 to vector<1x128xf32>
    %109 = arith.addf %107, %108 : vector<1x128xf32>
    %cst_24 = arith.constant 0.000000e+00 : f32
    %110 = vector.broadcast %cst_24 : f32 to vector<1x128xf32>
    %111 = arith.subf %110, %109 : vector<1x128xf32>
    %112 = math.exp %111 : vector<1x128xf32>
    %cst_25 = arith.constant 1.000000e+00 : f32
    %113 = vector.broadcast %cst_25 : f32 to vector<1x128xf32>
    %114 = arith.addf %113, %112 : vector<1x128xf32>
    %cst_26 = arith.constant 1.000000e+00 : f32
    %115 = vector.broadcast %cst_26 : f32 to vector<1x128xf32>
    %116 = arith.divf %115, %114 : vector<1x128xf32>
    %117 = vector.extract_strided_slice %15 {offsets = [48, 0], sizes = [24, 6], strides = [1, 1]} : vector<96x6xf32> to vector<24x6xf32>
    %118 = vector.extract_strided_slice %117 {offsets = [0, 0], sizes = [24, 1], strides = [1, 1]} : vector<24x6xf32> to vector<24x1xf32>
    %119 = vector.broadcast %118 : vector<24x1xf32> to vector<24x128xf32>
    %120 = vector.broadcast %10 : vector<1x128xf32> to vector<24x128xf32>
    %121 = arith.mulf %119, %120 : vector<24x128xf32>
    %122 = vector.extract_strided_slice %117 {offsets = [0, 1], sizes = [24, 1], strides = [1, 1]} : vector<24x6xf32> to vector<24x1xf32>
    %123 = vector.broadcast %122 : vector<24x1xf32> to vector<24x128xf32>
    %124 = vector.broadcast %11 : vector<1x128xf32> to vector<24x128xf32>
    %125 = arith.mulf %123, %124 : vector<24x128xf32>
    %126 = arith.addf %121, %125 : vector<24x128xf32>
    %127 = vector.extract_strided_slice %117 {offsets = [0, 2], sizes = [24, 1], strides = [1, 1]} : vector<24x6xf32> to vector<24x1xf32>
    %128 = vector.broadcast %127 : vector<24x1xf32> to vector<24x128xf32>
    %129 = vector.broadcast %12 : vector<1x128xf32> to vector<24x128xf32>
    %130 = arith.mulf %128, %129 : vector<24x128xf32>
    %131 = arith.addf %126, %130 : vector<24x128xf32>
    %132 = vector.extract_strided_slice %117 {offsets = [0, 3], sizes = [24, 1], strides = [1, 1]} : vector<24x6xf32> to vector<24x1xf32>
    %133 = vector.broadcast %132 : vector<24x1xf32> to vector<24x128xf32>
    %134 = vector.broadcast %13 : vector<1x128xf32> to vector<24x128xf32>
    %135 = arith.mulf %133, %134 : vector<24x128xf32>
    %136 = arith.addf %131, %135 : vector<24x128xf32>
    %137 = vector.extract_strided_slice %117 {offsets = [0, 4], sizes = [24, 1], strides = [1, 1]} : vector<24x6xf32> to vector<24x1xf32>
    %138 = vector.broadcast %137 : vector<24x1xf32> to vector<24x128xf32>
    %139 = vector.broadcast %14 : vector<1x128xf32> to vector<24x128xf32>
    %140 = arith.mulf %138, %139 : vector<24x128xf32>
    %141 = arith.addf %136, %140 : vector<24x128xf32>
    %142 = vector.extract_strided_slice %117 {offsets = [0, 5], sizes = [24, 1], strides = [1, 1]} : vector<24x6xf32> to vector<24x1xf32>
    %143 = vector.broadcast %142 : vector<24x1xf32> to vector<24x128xf32>
    %144 = arith.addf %141, %143 : vector<24x128xf32>
    %cst_27 = arith.constant 0.000000e+00 : f32
    %145 = vector.broadcast %cst_27 : f32 to vector<24x128xf32>
    %146 = arith.cmpf ogt, %144, %145 : vector<24x128xf32>
    %cst_28 = arith.constant 0.000000e+00 : f32
    %147 = vector.broadcast %cst_28 : f32 to vector<24x128xf32>
    %148 = arith.minimumf %144, %147 : vector<24x128xf32>
    %149 = math.exp %148 : vector<24x128xf32>
    %cst_29 = arith.constant 1.000000e+00 : f32
    %150 = vector.broadcast %cst_29 : f32 to vector<24x128xf32>
    %151 = arith.subf %149, %150 : vector<24x128xf32>
    %152 = arith.select %146, %144, %151 : vector<24x128xi1>, vector<24x128xf32>
    %153 = vector.extract_strided_slice %16 {offsets = [48, 0], sizes = [24, 1], strides = [1, 1]} : vector<96x1xf32> to vector<24x1xf32>
    %154 = vector.broadcast %153 : vector<24x1xf32> to vector<24x128xf32>
    %155 = arith.mulf %152, %154 : vector<24x128xf32>
    %cst_30 = arith.constant dense<0.000000e+00> : vector<128xf32>
    %156 = vector.multi_reduction <add>, %155, %cst_30 [0] : vector<24x128xf32> to vector<128xf32>
    %157 = vector.shape_cast %156 : vector<128xf32> to vector<1x128xf32>
    %158 = vector.broadcast %8 : f32 to vector<1x128xf32>
    %159 = arith.addf %157, %158 : vector<1x128xf32>
    %cst_31 = arith.constant 0.000000e+00 : f32
    %160 = vector.broadcast %cst_31 : f32 to vector<1x128xf32>
    %161 = arith.subf %160, %159 : vector<1x128xf32>
    %162 = math.exp %161 : vector<1x128xf32>
    %cst_32 = arith.constant 1.000000e+00 : f32
    %163 = vector.broadcast %cst_32 : f32 to vector<1x128xf32>
    %164 = arith.addf %163, %162 : vector<1x128xf32>
    %cst_33 = arith.constant 1.000000e+00 : f32
    %165 = vector.broadcast %cst_33 : f32 to vector<1x128xf32>
    %166 = arith.divf %165, %164 : vector<1x128xf32>
    %167 = vector.extract_strided_slice %15 {offsets = [72, 0], sizes = [24, 6], strides = [1, 1]} : vector<96x6xf32> to vector<24x6xf32>
    %168 = vector.extract_strided_slice %167 {offsets = [0, 0], sizes = [24, 1], strides = [1, 1]} : vector<24x6xf32> to vector<24x1xf32>
    %169 = vector.broadcast %168 : vector<24x1xf32> to vector<24x128xf32>
    %170 = vector.broadcast %10 : vector<1x128xf32> to vector<24x128xf32>
    %171 = arith.mulf %169, %170 : vector<24x128xf32>
    %172 = vector.extract_strided_slice %167 {offsets = [0, 1], sizes = [24, 1], strides = [1, 1]} : vector<24x6xf32> to vector<24x1xf32>
    %173 = vector.broadcast %172 : vector<24x1xf32> to vector<24x128xf32>
    %174 = vector.broadcast %11 : vector<1x128xf32> to vector<24x128xf32>
    %175 = arith.mulf %173, %174 : vector<24x128xf32>
    %176 = arith.addf %171, %175 : vector<24x128xf32>
    %177 = vector.extract_strided_slice %167 {offsets = [0, 2], sizes = [24, 1], strides = [1, 1]} : vector<24x6xf32> to vector<24x1xf32>
    %178 = vector.broadcast %177 : vector<24x1xf32> to vector<24x128xf32>
    %179 = vector.broadcast %12 : vector<1x128xf32> to vector<24x128xf32>
    %180 = arith.mulf %178, %179 : vector<24x128xf32>
    %181 = arith.addf %176, %180 : vector<24x128xf32>
    %182 = vector.extract_strided_slice %167 {offsets = [0, 3], sizes = [24, 1], strides = [1, 1]} : vector<24x6xf32> to vector<24x1xf32>
    %183 = vector.broadcast %182 : vector<24x1xf32> to vector<24x128xf32>
    %184 = vector.broadcast %13 : vector<1x128xf32> to vector<24x128xf32>
    %185 = arith.mulf %183, %184 : vector<24x128xf32>
    %186 = arith.addf %181, %185 : vector<24x128xf32>
    %187 = vector.extract_strided_slice %167 {offsets = [0, 4], sizes = [24, 1], strides = [1, 1]} : vector<24x6xf32> to vector<24x1xf32>
    %188 = vector.broadcast %187 : vector<24x1xf32> to vector<24x128xf32>
    %189 = vector.broadcast %14 : vector<1x128xf32> to vector<24x128xf32>
    %190 = arith.mulf %188, %189 : vector<24x128xf32>
    %191 = arith.addf %186, %190 : vector<24x128xf32>
    %192 = vector.extract_strided_slice %167 {offsets = [0, 5], sizes = [24, 1], strides = [1, 1]} : vector<24x6xf32> to vector<24x1xf32>
    %193 = vector.broadcast %192 : vector<24x1xf32> to vector<24x128xf32>
    %194 = arith.addf %191, %193 : vector<24x128xf32>
    %cst_34 = arith.constant 0.000000e+00 : f32
    %195 = vector.broadcast %cst_34 : f32 to vector<24x128xf32>
    %196 = arith.cmpf ogt, %194, %195 : vector<24x128xf32>
    %cst_35 = arith.constant 0.000000e+00 : f32
    %197 = vector.broadcast %cst_35 : f32 to vector<24x128xf32>
    %198 = arith.minimumf %194, %197 : vector<24x128xf32>
    %199 = math.exp %198 : vector<24x128xf32>
    %cst_36 = arith.constant 1.000000e+00 : f32
    %200 = vector.broadcast %cst_36 : f32 to vector<24x128xf32>
    %201 = arith.subf %199, %200 : vector<24x128xf32>
    %202 = arith.select %196, %194, %201 : vector<24x128xi1>, vector<24x128xf32>
    %203 = vector.extract_strided_slice %16 {offsets = [72, 0], sizes = [24, 1], strides = [1, 1]} : vector<96x1xf32> to vector<24x1xf32>
    %204 = vector.broadcast %203 : vector<24x1xf32> to vector<24x128xf32>
    %205 = arith.mulf %202, %204 : vector<24x128xf32>
    %cst_37 = arith.constant dense<0.000000e+00> : vector<128xf32>
    %206 = vector.multi_reduction <add>, %205, %cst_37 [0] : vector<24x128xf32> to vector<128xf32>
    %207 = vector.shape_cast %206 : vector<128xf32> to vector<1x128xf32>
    %208 = vector.broadcast %9 : f32 to vector<1x128xf32>
    %209 = arith.addf %207, %208 : vector<1x128xf32>
    %cst_38 = arith.constant 0.000000e+00 : f32
    %210 = vector.broadcast %cst_38 : f32 to vector<1x128xf32>
    %211 = arith.subf %210, %209 : vector<1x128xf32>
    %212 = math.exp %211 : vector<1x128xf32>
    %cst_39 = arith.constant 1.000000e+00 : f32
    %213 = vector.broadcast %cst_39 : f32 to vector<1x128xf32>
    %214 = arith.addf %213, %212 : vector<1x128xf32>
    %cst_40 = arith.constant 1.000000e+00 : f32
    %215 = vector.broadcast %cst_40 : f32 to vector<1x128xf32>
    %216 = arith.divf %215, %214 : vector<1x128xf32>
    %217 = arith.mulf %116, %116 : vector<1x128xf32>
    %218 = arith.mulf %166, %166 : vector<1x128xf32>
    %219 = arith.mulf %216, %216 : vector<1x128xf32>
    %220 = vector.broadcast %4 : f32 to vector<1x128xf32>
    %221 = arith.subf %220, %10 : vector<1x128xf32>
    %222 = arith.subf %221, %11 : vector<1x128xf32>
    %223 = arith.subf %222, %12 : vector<1x128xf32>
    %224 = arith.subf %223, %13 : vector<1x128xf32>
    %225 = arith.subf %224, %14 : vector<1x128xf32>
    %226 = arith.mulf %66, %225 : vector<1x128xf32>
    %227 = arith.addf %11, %12 : vector<1x128xf32>
    %228 = arith.mulf %226, %227 : vector<1x128xf32>
    %229 = vector.broadcast %5 : f32 to vector<1x128xf32>
    %230 = arith.mulf %228, %229 : vector<1x128xf32>
    %231 = vector.broadcast %1 : f32 to vector<1x128xf32>
    %232 = arith.mulf %231, %10 : vector<1x128xf32>
    %233 = arith.subf %230, %232 : vector<1x128xf32>
    %234 = vector.broadcast %1 : f32 to vector<1x128xf32>
    %235 = arith.mulf %234, %10 : vector<1x128xf32>
    %236 = vector.broadcast %3 : f32 to vector<1x128xf32>
    %237 = arith.mulf %236, %11 : vector<1x128xf32>
    %238 = arith.subf %235, %237 : vector<1x128xf32>
    %239 = arith.mulf %217, %11 : vector<1x128xf32>
    %240 = arith.subf %238, %239 : vector<1x128xf32>
    %241 = vector.broadcast %3 : f32 to vector<1x128xf32>
    %242 = arith.mulf %241, %11 : vector<1x128xf32>
    %243 = arith.mulf %218, %12 : vector<1x128xf32>
    %244 = arith.subf %242, %243 : vector<1x128xf32>
    %245 = arith.mulf %219, %12 : vector<1x128xf32>
    %246 = arith.subf %244, %245 : vector<1x128xf32>
    %247 = arith.mulf %217, %11 : vector<1x128xf32>
    %248 = arith.mulf %218, %12 : vector<1x128xf32>
    %249 = arith.addf %247, %248 : vector<1x128xf32>
    %250 = arith.mulf %219, %12 : vector<1x128xf32>
    %c0_41 = arith.constant 0 : index
    %c0_42 = arith.constant 0 : index
    %251 = vector.load %arg5[%c0_41, %c0_42] : memref<5x128xf32, #tpu.memory_space<vmem>>, vector<1x128xf32>
    tpu.vector_store %arg5[%c0_41, %c0_42], %233 {strides = array<i32>} : memref<5x128xf32, #tpu.memory_space<vmem>>, vector<1x128xf32>,
    %c1_43 = arith.constant 1 : index
    %c0_44 = arith.constant 0 : index
    %252 = vector.load %arg5[%c1_43, %c0_44] : memref<5x128xf32, #tpu.memory_space<vmem>>, vector<1x128xf32>
    tpu.vector_store %arg5[%c1_43, %c0_44], %240 {strides = array<i32>} : memref<5x128xf32, #tpu.memory_space<vmem>>, vector<1x128xf32>,
    %c2_45 = arith.constant 2 : index
    %c0_46 = arith.constant 0 : index
    %253 = vector.load %arg5[%c2_45, %c0_46] : memref<5x128xf32, #tpu.memory_space<vmem>>, vector<1x128xf32>
    tpu.vector_store %arg5[%c2_45, %c0_46], %246 {strides = array<i32>} : memref<5x128xf32, #tpu.memory_space<vmem>>, vector<1x128xf32>,
    %c3_47 = arith.constant 3 : index
    %c0_48 = arith.constant 0 : index
    %254 = vector.load %arg5[%c3_47, %c0_48] : memref<5x128xf32, #tpu.memory_space<vmem>>, vector<1x128xf32>
    tpu.vector_store %arg5[%c3_47, %c0_48], %249 {strides = array<i32>} : memref<5x128xf32, #tpu.memory_space<vmem>>, vector<1x128xf32>,
    %c4_49 = arith.constant 4 : index
    %c0_50 = arith.constant 0 : index
    %255 = vector.load %arg5[%c4_49, %c0_50] : memref<5x128xf32, #tpu.memory_space<vmem>>, vector<1x128xf32>
    tpu.vector_store %arg5[%c4_49, %c0_50], %250 {strides = array<i32>} : memref<5x128xf32, #tpu.memory_space<vmem>>, vector<1x128xf32>,
    return
  }
  func.func @transform_0(%arg0: i32) -> i32 {
    %c0_i32 = arith.constant 0 : i32
    %c0_i32_0 = arith.constant 0 : i32
    return %c0_i32 : i32
  }
  func.func @transform_1(%arg0: i32) -> (i32, i32) {
    %c0_i32 = arith.constant 0 : i32
    %c0_i32_0 = arith.constant 0 : i32
    return %c0_i32, %arg0 : i32, i32
  }
  func.func @transform_2(%arg0: i32) -> (i32, i32) {
    %c0_i32 = arith.constant 0 : i32
    %c0_i32_0 = arith.constant 0 : i32
    %c0_i32_1 = arith.constant 0 : i32
    return %c0_i32, %c0_i32_0 : i32, i32
  }
  func.func @transform_3(%arg0: i32) -> (i32, i32) {
    %c0_i32 = arith.constant 0 : i32
    %c0_i32_0 = arith.constant 0 : i32
    %c0_i32_1 = arith.constant 0 : i32
    return %c0_i32, %c0_i32_0 : i32, i32
  }
  func.func @transform_4(%arg0: i32) -> (i32, i32) {
    %c0_i32 = arith.constant 0 : i32
    %c0_i32_0 = arith.constant 0 : i32
    return %c0_i32, %arg0 : i32, i32
  }
}

</mosaic_0001>

<bundles_post_ra>
// kernel: odefunc_forward_lane_major.1
= control target key start
LH: loop header
LB: loop body
LE: loop exit
PB: predicated region body
PF: predicated region fallthrough
CT: control target
= control target key end

     0   :  { %9 = vsyncpa [#allocation3], 0  ;;  %s1308_s0 = inlined_call_operand.vmem [shape: f32[8], index: 0, kind: input, shape index: {}]   ;;  %s1309_s1 = inlined_call_operand.vmem [shape: f32[5,128], index: 1, kind: input, shape index: {}]   ;;  %s1310_s2 = inlined_call_operand.vmem [shape: f32[96,6], index: 2, kind: input, shape index: {}]   ;;  %s1311_s3 = inlined_call_operand.vmem [shape: f32[96,1], index: 3, kind: input, shape index: {}]   ;;  %s1312_s4 = inlined_call_operand.vmem [shape: f32[5,128], index: 4, kind: output, shape index: {}]  }
   0x1   :  { %s16_s17 = sshll.u32 %s1308_s0, 4  ;;  %s17_s17 = int_to_ptr.vmem [resolvable:$true] %s16_s17 }
   0x2   :  { %s855_s18 = scalar_lea.vmem %s17_s17, 16  ;;  %p860_p1 = scmp.lt.s32.totalorder %s17_s17, %s17_s17 }
   0x3   :  { %p856_p0 = scmp.ne.s32.totalorder %s17_s17, %s855_s18  ;;  %p861_p2 = scmp.lt.s32.totalorder %s855_s18, %s855_s18 }
   0x5   :  { %p862_p3 = por %p861_p2, %p860_p1 }
   0x7   :  { %p863_p4 = pnand %p862_p3, %p856_p0 }
   0x9   :  { %866 = shalt.err (!%p863_p4)
}
   0xa   :  { %s869_s19 = smov [#allocation2]  }
   0xb   :  { %19 = dma.vmem_to_smem %s17_s17, 16, %s869_s19, [#allocation3]  }
   0xc   :  { %867 = dma.done.wait [#allocation3], 16  }
   0xd   :  { %868 = vsyncadd [#allocation3], 4294967280 }
   0xe   :  { %29 = sfence }
   0xf   :  { %v47_v0 = vld [vmem:[%s1310_s2 + $0x10] sm:$0xff]  ;;  %v45_v1 = vld [vmem:[%s1310_s2] sm:$0xff]  ;;  %v870_v2 = vmov 0   ;;  %v915_v3 = vld [vmem:[%s1310_s2 + $0x8] sm:$0xff]  ;;  %v871_v4 = vmov 1   ;;  %v872_v7 = vmov 2   ;;  %v84_v34 = vlaneseq }
  0x10   :  { %781 = vset.pattern.permute.xlu1 %v870_v2  ;;  %780 = vset.pattern.permute.xlu0 %v870_v2  ;;  %v58_v5 = vld [vmem:[%s1311_s3 + $0x8] sm:$0xff]  ;;  %v925_v6 = vld [vmem:[%s1310_s2 + $0x20] sm:$0xff]  ;;  %v60_v8 = vld [vmem:[%s1311_s3 + $0x18] sm:$0xff]  ;;  %v873_v11 = vmov 3   ;;  %v874_v13 = vmov 4   ;;  %v875_v16 = vmov 5  }
  0x11   :  { %81 = vperm.xlu1 %781, %v47_v0   ;;  %71 = vperm.xlu0 %780, %v45_v1   ;;  %v935_v9 = vld [vmem:[%s1310_s2 + $0x30] sm:$0xff]  ;;  %v941_v10 = vld [vmem:[%s1310_s2 + $0x40] sm:$0xff]  ;;  %v48_v12 = vld [vmem:[%s1310_s2 + $0x18] sm:$0xff]  ;;  %v85_v37 = vshrl.u32 %v84_v34, 7  ;;  %s758_s22 = sld [smem:[#allocation2 + $0x5]]  ;;  %s755_s23 = sld [smem:[#allocation2 + $0x2]] }
  0x12   :  { %v954_v14 = vld [vmem:[%s1310_s2 + $0x38] sm:$0xff]  ;;  %v960_v15 = vld [vmem:[%s1310_s2 + $0x48] sm:$0xff]  ;;  %v57_v18 = vld [vmem:[%s1311_s3] sm:$0xff]  ;;  %s30_s0 = sld [smem:[#allocation2]]  ;;  %s754_s24 = sld [smem:[#allocation2 + $0x1]] }
  0x13   :  { %v967_v17 = vld [vmem:[%s1310_s2 + $0x58] sm:$0xff]  ;;  %v59_v19 = vld [vmem:[%s1311_s3 + $0x10] sm:$0xff]  ;;  %v50_v20 = vld [vmem:[%s1310_s2 + $0x28] sm:$0xff]  ;;  %v86_v41 = vsub.s32 0, %v85_v37  ;;  %s756_s25 = sld [smem:[#allocation2 + $0x3]]  ;;  %s759_s5 = sld [smem:[#allocation2 + $0x6]] }
  0x14   :  { %v1001_v21 = vld [vmem:[%s1310_s2 + $0x50] sm:$0xff]  ;;  %v61_v22 = vld [vmem:[%s1311_s3 + $0x20] sm:$0xff]  ;;  %v62_v23 = vld [vmem:[%s1311_s3 + $0x28] sm:$0xff]  ;;  %s760_s6 = sld [smem:[#allocation2 + $0x7]] }
  0x15   :  { %782 = vset.pattern.permute.xlu1 %v871_v4  ;;  %76 = vperm.xlu0 %780, %v915_v3   ;;  %v64_v24 = vld [vmem:[%s1311_s3 + $0x38] sm:$0xff]  ;;  %v67_v25 = vld [vmem:[%s1311_s3 + $0x50] sm:$0xff]  ;;  %v1056_v39 = vld [vmem:[%s1309_s1 + $0x1] sm:$0x1] }
  0x16   :  { %92 = vperm.xlu1 %782, %v45_v1   ;;  %v1063_v43 = vld [vmem:[%s1309_s1] sm:$0x1]  ;;  %v1068_v44 = vld [vmem:[%s1309_s1 + $0x2] sm:$0x1]  ;;  %v1072_v45 = vrot.slane %v1056_v39, %v86_v41  ;;  %v1078_v46 = vld [vmem:[%s1309_s1 + $0x3] sm:$0x1] }
  0x17   :  { %v1083_v48 = vrot.slane %v1063_v43, %v86_v41  ;;  %v1086_v49 = vrot.slane %v1068_v44, %v86_v41  ;;  %v1093_v51 = vld [vmem:[%s1309_s1 + $0x4] sm:$0x1]  ;;  %v1098_v54 = vrot.slane %v1078_v46, %v86_v41 }
  0x18   :  { %v1104_v57 = vrot.slane %v1093_v51, %v86_v41  ;;  %s31_s2 = sand.u32 2147483647, %s30_s0  ;;  %s33_s26 = sand.u32 2147483647, %s754_s24 }
  0x19   :  { %219 = vperm.xlu0 %780, %v58_v5  }
  0x1a   :  { %100 = vperm.xlu1 %782, %v47_v0  }
  0x1d   :  { %253 = vperm.xlu0 %780, %v925_v6  }
  0x1e   :  { %783 = vset.pattern.permute.xlu1 %v872_v7 }
  0x1f   :  { %114 = vperm.xlu1 %783, %v45_v1  }
  0x21   :  { %371 = vperm.xlu0 %780, %v60_v8  }
  0x23   :  { %122 = vperm.xlu1 %783, %v47_v0  }
  0x25   :  { %405 = vperm.xlu0 %780, %v935_v9  }
  0x27   :  { %784 = vset.pattern.permute.xlu1 %v873_v11 }
  0x28   :  { %136 = vperm.xlu1 %784, %v45_v1  }
  0x29   :  { %415 = vperm.xlu0 %780, %v941_v10  }
  0x2c   :  { %144 = vperm.xlu1 %784, %v47_v0  }
  0x2d   :  { %794 = vset.pattern.permute.xlu0 %v871_v4 }
  0x2e   :  { %96 = vperm.xlu0 %794, %v915_v3  }
  0x30   :  { %785 = vset.pattern.permute.xlu1 %v874_v13 }
  0x31   :  { %158 = vperm.xlu1 %785, %v45_v1  }
  0x32   :  { %265 = vperm.xlu0 %794, %v48_v12  }
  0x35   :  { %166 = vperm.xlu1 %785, %v47_v0  }
  0x36   :  { %426 = vperm.xlu0 %794, %v954_v14  }
  0x39   :  { %786 = vset.pattern.permute.xlu1 %v875_v16 }
  0x3a   :  { %180 = vperm.xlu1 %786, %v45_v1   ;;  %579 = vperm.xlu0 %794, %v960_v15  }
  0x3e   :  { %188 = vperm.xlu1 %786, %v47_v0   ;;  %587 = vperm.xlu0 %794, %v967_v17  }
  0x42   :  { %787 = vset.pattern.permute.xlu1 %v870_v2  ;;  %802 = vset.pattern.permute.xlu0 %v873_v11 }
  0x43   :  { %214 = vperm.xlu1 %787, %v57_v18   ;;  %140 = vperm.xlu0 %802, %v915_v3  }
  0x47   :  { %224 = vperm.xlu1 %787, %v59_v19   ;;  %301 = vperm.xlu0 %802, %v48_v12  }
  0x4b   :  { %248 = vperm.xlu1 %787, %v48_v12   ;;  %458 = vperm.xlu0 %802, %v935_v9  }
  0x4f   :  { %258 = vperm.xlu1 %787, %v50_v20   ;;  %466 = vperm.xlu0 %802, %v941_v10  }
  0x53   :  { %788 = vset.pattern.permute.xlu1 %v871_v4  ;;  %804 = vset.pattern.permute.xlu0 %v872_v7 }
  0x54   :  { %269 = vperm.xlu1 %788, %v925_v6   ;;  %118 = vperm.xlu0 %804, %v915_v3  }
  0x58   :  { %273 = vperm.xlu1 %788, %v50_v20   ;;  %283 = vperm.xlu0 %804, %v48_v12  }
  0x5c   :  { %789 = vset.pattern.permute.xlu1 %v872_v7  ;;  %444 = vperm.xlu0 %804, %v954_v14  }
  0x5d   :  { %287 = vperm.xlu1 %789, %v925_v6  }
  0x60   :  { %605 = vperm.xlu0 %804, %v967_v17  }
  0x61   :  { %291 = vperm.xlu1 %789, %v50_v20  }
  0x64   :  { %806 = vset.pattern.permute.xlu0 %v874_v13 }
  0x65   :  { %790 = vset.pattern.permute.xlu1 %v873_v11  ;;  %162 = vperm.xlu0 %806, %v915_v3  }
  0x66   :  { %305 = vperm.xlu1 %790, %v925_v6  }
  0x69   :  { %319 = vperm.xlu0 %806, %v48_v12  }
  0x6a   :  { %309 = vperm.xlu1 %790, %v50_v20  }
  0x6d   :  { %484 = vperm.xlu0 %806, %v941_v10  }
  0x6e   :  { %791 = vset.pattern.permute.xlu1 %v874_v13 }
  0x6f   :  { %323 = vperm.xlu1 %791, %v925_v6  }
  0x71   :  { %637 = vperm.xlu0 %806, %v1001_v21  }
  0x73   :  { %327 = vperm.xlu1 %791, %v50_v20  }
  0x75   :  { %809 = vset.pattern.permute.xlu0 %v875_v16 }
  0x76   :  { %184 = vperm.xlu0 %809, %v915_v3  }
  0x77   :  { %792 = vset.pattern.permute.xlu1 %v875_v16 }
  0x78   :  { %341 = vperm.xlu1 %792, %v925_v6  }
  0x7a   :  { %337 = vperm.xlu0 %809, %v48_v12  }
  0x7c   :  { %345 = vperm.xlu1 %792, %v50_v20  }
  0x7e   :  { %498 = vperm.xlu0 %809, %v954_v14  }
  0x80   :  { %793 = vset.pattern.permute.xlu1 %v870_v2 }
  0x81   :  { %376 = vperm.xlu1 %793, %v61_v22  }
  0x82   :  { %651 = vperm.xlu0 %809, %v960_v15  }
  0x85   :  { %381 = vperm.xlu1 %793, %v62_v23  }
  0x86   :  { %659 = vperm.xlu0 %809, %v967_v17  }
  0x89   :  { %410 = vperm.xlu1 %793, %v954_v14  }
  0x8a   :  { %814 = vset.pattern.permute.xlu0 %v870_v2 }
  0x8b   :  { %533 = vperm.xlu0 %814, %v64_v24  }
  0x8d   :  { %795 = vset.pattern.permute.xlu1 %v871_v4 }
  0x8e   :  { %422 = vperm.xlu1 %795, %v935_v9  }
  0x8f   :  { %690 = vperm.xlu0 %814, %v67_v25  }
  0x90   :  { %v1029_v26 = vpop.permute.xlu1 %81  ;;  %v72_v27 = vpop.permute.xlu0 %71 }
  0x91   :  { %v88_v52 = vmul.f32 %v1083_v48, %v72_v27 }
  0x92   :  { %430 = vperm.xlu1 %795, %v941_v10  }
  0x94   :  { %v1032_v28 = vpop.permute.xlu0 %76 }
  0x95   :  { %v93_v29 = vpop.permute.xlu1 %92 }
  0x96   :  { %796 = vset.pattern.permute.xlu1 %v872_v7  ;;  %v107_v53 = vmul.f32 %v1072_v45, %v93_v29 }
  0x97   :  { %440 = vperm.xlu1 %796, %v935_v9  }
  0x98   :  { %v1036_v30 = vpop.permute.xlu0 %219  ;;  %v110_v59 = vadd.f32 %v107_v53, %v88_v52 }
  0x99   :  { %v1038_v31 = vpop.permute.xlu1 %100 }
  0x9b   :  { %797 = vset.pattern.permute.xlu1 %v870_v2 }
  0x9c   :  { %562 = vperm.xlu1 %797, %v960_v15   ;;  %v1042_v32 = vpop.permute.xlu0 %253 }
  0x9e   :  { %v115_v33 = vpop.permute.xlu1 %114 }
  0x9f   :  { %v129_v55 = vmul.f32 %v1086_v49, %v115_v33 }
  0xa0   :  { %567 = vperm.xlu1 %797, %v1001_v21   ;;  %v1045_v35 = vpop.permute.xlu0 %371 }
  0xa1   :  { %v132_v61 = vadd.f32 %v129_v55, %v110_v59 }
  0xa2   :  { %v1047_v36 = vpop.permute.xlu1 %122 }
  0xa4   :  { %798 = vset.pattern.permute.xlu1 %v871_v4  ;;  %v1050_v38 = vpop.permute.xlu0 %405 }
  0xa5   :  { %583 = vperm.xlu1 %798, %v1001_v21  }
  0xa7   :  { %v137_v40 = vpop.permute.xlu1 %136 }
  0xa8   :  { %v1058_v42 = vpop.permute.xlu0 %415  ;;  %v151_v60 = vmul.f32 %v1098_v54, %v137_v40 }
  0xa9   :  { %799 = vset.pattern.permute.xlu1 %v872_v7 }
  0xaa   :  { %448 = vperm.xlu1 %799, %v941_v10   ;;  %v154_v1 = vadd.f32 %v151_v60, %v132_v61  ;;  %v90_v61 = vmul.f32 %v1083_v48, %v1029_v26 }
  0xab   :  { %v1080_v47 = vpop.permute.xlu1 %144 }
  0xad   :  { %v1088_v50 = vpop.permute.xlu0 %96 }
  0xae   :  { %800 = vset.pattern.permute.xlu1 %v873_v11 }
  0xaf   :  { %462 = vperm.xlu1 %800, %v954_v14  }
  0xb0   :  { %v159_v56 = vpop.permute.xlu1 %158 }
  0xb1   :  { %v1106_v58 = vpop.permute.xlu0 %265  ;;  %v173_v62 = vmul.f32 %v1104_v57, %v159_v56  ;;  %v109_v56 = vmul.f32 %v1072_v45, %v1038_v31 }
  0xb3   :  { %801 = vset.pattern.permute.xlu1 %v870_v2  ;;  %v176_v3 = vadd.f32 %v173_v62, %v154_v1  ;;  %v131_v62 = vmul.f32 %v1086_v49, %v1047_v36  ;;  %v112_v31 = vadd.f32 %v109_v56, %v90_v61  ;;  %v153_v1 = vmul.f32 %v1098_v54, %v1080_v47 }
  0xb4   :  { %572 = vperm.xlu1 %801, %v967_v17   ;;  %v167_v63 = vpop.permute.xlu1 %166 }
  0xb5   :  { %v1112_v0 = vpop.permute.xlu0 %426  ;;  %v175_v26 = vmul.f32 %v1104_v57, %v167_v63  ;;  %v262_v63 = vmul.f32 %v1042_v32, %v1083_v48 }
  0xb8   :  { %803 = vset.pattern.permute.xlu1 %v872_v7 }
  0xb9   :  { %597 = vperm.xlu1 %803, %v960_v15   ;;  %v181_v4 = vpop.permute.xlu1 %180  ;;  %v1116_v5 = vpop.permute.xlu0 %579 }
  0xba   :  { %v191_v6 = vadd.f32 %v181_v4, %v176_v3  ;;  %v134_v4 = vadd.f32 %v131_v62, %v112_v31  ;;  %v65_v62 = vld [vmem:[%s1311_s3 + $0x40] sm:$0xff] }
  0xbc   :  { %v197_v8 = vmin.f32 %v191_v6, 0.0  ;;  %vm194_vm0 = vcmp.gt.f32.partialorder %v191_v6, 0.0 }
  0xbd   :  { %601 = vperm.xlu1 %803, %v1001_v21   ;;  %v189_v12 = vpop.permute.xlu1 %188  ;;  %v1119_v18 = vpop.permute.xlu0 %587 }
  0xbe   :  { %v200_v19 = vmul.f32 1.442695, %v197_v8 }
  0xc0   :  { %815 = vpow2.f32 %v200_v19 }
  0xc1   :  { %805 = vset.pattern.permute.xlu1 %v874_v13 }
  0xc2   :  { %476 = vperm.xlu1 %805, %v935_v9   ;;  %v215_v7 = vpop.permute.xlu1 %214  ;;  %v141_v20 = vpop.permute.xlu0 %140 }
  0xc3   :  { %v152_v19 = vmul.f32 %v1098_v54, %v141_v20  ;;  %v63_v20 = vld [vmem:[%s1311_s3 + $0x30] sm:$0xff] }
  0xc6   :  { %480 = vperm.xlu1 %805, %v954_v14   ;;  %v1124_v22 = vpop.permute.xlu1 %224  ;;  %v1126_v23 = vpop.permute.xlu0 %301 }
  0xca   :  { %v816_v24 = vpop.eup %815  ;;  %807 = vset.pattern.permute.xlu1 %v873_v11  ;;  %v249_v25 = vpop.permute.xlu1 %248 }
  0xcb   :  { %v1129_v27 = vpop.permute.xlu0 %458  ;;  %v761_v29 = vadd.f32 -1.0, %v816_v24  ;;  %615 = vperm.xlu1 %807, %v960_v15   ;;  %v276_v24 = vmul.f32 %v1106_v58, %v1072_v45 }
  0xcd   :  { %v209_v33 = vsel %vm194_vm0, %v191_v6, %v761_v29 }
  0xce   :  { %v1132_v34 = vmul.f32 %v215_v7, %v209_v33  ;;  %v1134_v37 = vpop.permute.xlu1 %258 }
  0xcf   :  { %v1136_v14 = vpop.permute.xlu0 %466  ;;  %619 = vperm.xlu1 %807, %v1001_v21  }
  0xd3   :  { %623 = vperm.xlu1 %807, %v967_v17   ;;  %v270_v40 = vpop.permute.xlu1 %269  ;;  %v119_v11 = vpop.permute.xlu0 %118 }
  0xd7   :  { %808 = vset.pattern.permute.xlu1 %v874_v13  ;;  %v274_v41 = vpop.permute.xlu1 %273  ;;  %v284_v52 = vpop.permute.xlu0 %283 }
  0xd8   :  { %633 = vperm.xlu1 %808, %v960_v15   ;;  %v89_v15 = vmul.f32 %v1083_v48, %v1032_v28  ;;  %v156_v28 = vadd.f32 %v153_v1, %v134_v4  ;;  %v263_v4 = vmul.f32 %v1134_v37, %v1083_v48 }
  0xda   :  { %v178_v8 = vadd.f32 %v175_v26, %v156_v28  ;;  %v66_v28 = vld [vmem:[%s1311_s3 + $0x48] sm:$0xff] }
  0xdb   :  { %v1142_v53 = vpop.permute.xlu0 %444 }
  0xdc   :  { %810 = vset.pattern.permute.xlu1 %v875_v16  ;;  %v288_v55 = vpop.permute.xlu1 %287  ;;  %v1167_v47 = vadd.f32 %v189_v12, %v178_v8  ;;  %v294_v12 = vmul.f32 %v284_v52, %v1086_v49  ;;  %v312_v52 = vmul.f32 %v1126_v23, %v1098_v54 }
  0xdd   :  { %494 = vperm.xlu1 %810, %v935_v9   ;;  %v108_v9 = vmul.f32 %v1072_v45, %v1088_v50 }
  0xde   :  { %v199_v58 = vmin.f32 %v1167_v47, 0.0  ;;  %vm196_vm1 = vcmp.gt.f32.partialorder %v1167_v47, 0.0 }
  0xdf   :  { %v1148_v59 = vpop.permute.xlu0 %605  ;;  %v111_v36 = vadd.f32 %v108_v9, %v89_v15 }
  0xe0   :  { %v292_v60 = vpop.permute.xlu1 %291 }
  0xe1   :  { %811 = vset.pattern.permute.xlu1 %v874_v13  ;;  %v130_v13 = vmul.f32 %v1086_v49, %v119_v11  ;;  %v296_v26 = vmul.f32 %v292_v60, %v1086_v49 }
  0xe2   :  { %641 = vperm.xlu1 %811, %v967_v17  }
  0xe3   :  { %v133_v7 = vadd.f32 %v130_v13, %v111_v36 }
  0xe4   :  { %v163_v3 = vpop.permute.xlu0 %162 }
  0xe5   :  { %v306_v6 = vpop.permute.xlu1 %305  ;;  %v174_v33 = vmul.f32 %v1104_v57, %v163_v3  ;;  %v155_v11 = vadd.f32 %v152_v19, %v133_v7  ;;  %v204_v3 = vmul.f32 1.442695, %v199_v58 }
  0xe6   :  { %812 = vset.pattern.permute.xlu1 %v875_v16  ;;  %v261_v16 = vmul.f32 %v249_v25, %v1083_v48  ;;  %v313_v56 = vmul.f32 %v306_v6, %v1098_v54 }
  0xe7   :  { %502 = vperm.xlu1 %812, %v941_v10   ;;  %v277_v10 = vmul.f32 %v270_v40, %v1072_v45  ;;  %v177_v1 = vadd.f32 %v174_v33, %v155_v11  ;;  %817 = vpow2.f32 %v204_v3 }
  0xe8   :  { %v320_v50 = vpop.permute.xlu0 %319  ;;  %v279_v25 = vadd.f32 %v276_v24, %v261_v16 }
  0xe9   :  { %v310_v17 = vpop.permute.xlu1 %309  ;;  %v280_v40 = vadd.f32 %v277_v10, %v262_v63  ;;  %v330_v23 = vmul.f32 %v320_v50, %v1104_v57 }
  0xea   :  { %v297_v15 = vadd.f32 %v294_v12, %v279_v25  ;;  %v314_v36 = vmul.f32 %v310_v17, %v1098_v54  ;;  %v68_v17 = vld [vmem:[%s1311_s3 + $0x58] sm:$0xff]  ;;  %s757_s3 = sld [smem:[#allocation2 + $0x4]] }
  0xeb   :  { %655 = vperm.xlu1 %812, %v1001_v21   ;;  %v295_v21 = vmul.f32 %v288_v55, %v1086_v49  ;;  %v278_v55 = vmul.f32 %v274_v41, %v1072_v45 }
  0xec   :  { %v1176_v29 = vpop.permute.xlu0 %484  ;;  %v315_v7 = vadd.f32 %v312_v52, %v297_v15 }
  0xed   :  { %v298_v9 = vadd.f32 %v295_v21, %v280_v40  ;;  %v281_v41 = vadd.f32 %v278_v55, %v263_v4 }
  0xee   :  { %v324_v32 = vpop.permute.xlu1 %323  ;;  %v333_v50 = vadd.f32 %v330_v23, %v315_v7  ;;  %v452_v23 = vmul.f32 %v1142_v53, %v1086_v49  ;;  %v418_v53 = vmul.f32 %v1050_v38, %v1083_v48 }
  0xef   :  { %813 = vset.pattern.permute.xlu1 %v870_v2  ;;  %v331_v2 = vmul.f32 %v324_v32, %v1104_v57  ;;  %v316_v6 = vadd.f32 %v313_v56, %v298_v9  ;;  %v299_v63 = vadd.f32 %v296_v26, %v281_v41 }
  0xf0   :  { %528 = vperm.xlu1 %813, %v63_v20   ;;  %v1187_v61 = vpop.permute.xlu0 %637 }
  0xf1   :  { %v334_v19 = vadd.f32 %v331_v2, %v316_v6  ;;  %v317_v10 = vadd.f32 %v314_v36, %v299_v63 }
  0xf2   :  { %v328_v31 = vpop.permute.xlu1 %327 }
  0xf3   :  { %v332_v37 = vmul.f32 %v328_v31, %v1104_v57 }
  0xf4   :  { %538 = vperm.xlu1 %813, %v65_v62   ;;  %v818_v62 = vpop.eup %817 }
  0xf5   :  { %v185_v13 = vpop.permute.xlu0 %184  ;;  %v335_v11 = vadd.f32 %v332_v37, %v317_v10  ;;  %v763_v9 = vadd.f32 -1.0, %v818_v62 }
  0xf6   :  { %v192_v8 = vadd.f32 %v185_v13, %v177_v1  ;;  %v434_v1 = vmul.f32 %v1112_v0, %v1072_v45 }
  0xf7   :  { %v342_v60 = vpop.permute.xlu1 %341  ;;  %v211_v26 = vsel %vm196_vm1, %v1167_v47, %v763_v9  ;;  %v238_v9 = vstv %s757_s3 }
  0xf8   :  { %v198_v24 = vmin.f32 %v192_v8, 0.0  ;;  %v349_v16 = vadd.f32 %v342_v60, %v334_v19  ;;  %685 = vperm.xlu1 %813, %v66_v28   ;;  %vm195_vm2 = vcmp.gt.f32.partialorder %v192_v8, 0.0  ;;  %v229_v37 = vmul.f32 %v1124_v22, %v211_v26 }
  0xf9   :  { %v338_v20 = vpop.permute.xlu0 %337 }
  0xfa   :  { %v202_v12 = vmul.f32 1.442695, %v198_v24  ;;  %v355_v21 = vmin.f32 %v349_v16, 0.0  ;;  %v348_v33 = vadd.f32 %v338_v20, %v333_v50  ;;  %vm352_vm3 = vcmp.gt.f32.partialorder %v349_v16, 0.0 }
  0xfb   :  { %v346_v32 = vpop.permute.xlu1 %345 }
  0xfc   :  { %819 = vpow2.f32 %v202_v12  ;;  %v359_v58 = vmul.f32 1.442695, %v355_v21  ;;  %v354_v25 = vmin.f32 %v348_v33, 0.0  ;;  %695 = vperm.xlu1 %813, %v68_v17   ;;  %v350_v40 = vadd.f32 %v346_v32, %v335_v11 }
  0xfd   :  { %vm351_vm4 = vcmp.gt.f32.partialorder %v348_v33, 0.0 }
  0xfe   :  { %821 = vpow2.f32 %v359_v58  ;;  %v357_v56 = vmul.f32 1.442695, %v354_v25  ;;  %v356_v52 = vmin.f32 %v350_v40, 0.0  ;;  %vm353_vm5 = vcmp.gt.f32.partialorder %v350_v40, 0.0 }
 0x100   :  { %823 = vpow2.f32 %v357_v56  ;;  %v377_v55 = vpop.permute.xlu1 %376  ;;  %v361_v15 = vmul.f32 1.442695, %v356_v52 }
 0x102   :  { %825 = vpow2.f32 %v361_v15 }
 0x104   :  { %v382_v2 = vpop.permute.xlu1 %381 }
 0x106   :  { %v820_v31 = vpop.eup %819 }
 0x107   :  { %v762_v3 = vadd.f32 -1.0, %v820_v31 }
 0x108   :  { %v822_v4 = vpop.eup %821  ;;  %v411_v6 = vpop.permute.xlu1 %410 }
 0x109   :  { %v210_v41 = vsel %vm195_vm2, %v192_v8, %v762_v3  ;;  %v765_v36 = vadd.f32 -1.0, %v822_v4  ;;  %v419_v13 = vmul.f32 %v411_v6, %v1083_v48 }
 0x10a   :  { %v824_v28 = vpop.eup %823  ;;  %v228_v19 = vmul.f32 %v1036_v30, %v210_v41  ;;  %v395_v41 = vstv %s758_s22 }
 0x10b   :  { %v764_v0 = vadd.f32 -1.0, %v824_v28  ;;  %v367_v7 = vsel %vm352_vm3, %v349_v16, %v765_v36  ;;  %v437_v63 = vadd.f32 %v434_v1, %v419_v13 }
 0x10c   :  { %v230_v47 = vadd.f32 %v228_v19, %v1132_v34  ;;  %v826_v60 = vpop.eup %825  ;;  %v385_v24 = vmul.f32 %v377_v55, %v367_v7  ;;  %v720_v19 = vstv %s755_s23 }
 0x10d   :  { %v366_v8 = vsel %vm351_vm4, %v348_v33, %v764_v0  ;;  %v423_v50 = vpop.permute.xlu1 %422  ;;  %v1220_v10 = vadd.f32 %v452_v23, %v437_v63  ;;  %v766_v17 = vadd.f32 -1.0, %v826_v60  ;;  %v420_v60 = vmul.f32 %v1058_v42, %v1083_v48 }
 0x10e   :  { %v231_v20 = vadd.f32 %v230_v47, %v229_v37  ;;  %v384_v30 = vmul.f32 %v1045_v35, %v366_v8  ;;  %v433_v16 = vmul.f32 %v423_v50, %v1072_v45  ;;  %v469_v35 = vmul.f32 %v1129_v27, %v1098_v54 }
 0x10f   :  { %v368_v34 = vsel %vm353_vm5, %v350_v40, %v766_v17  ;;  %v721_v37 = vsub.f32 %v720_v19, %v1063_v43  ;;  %v489_v17 = vmul.f32 %v1176_v29, %v1104_v57  ;;  %v592_v29 = vmul.f32 %v1119_v18, %v1072_v45 }
 0x110   :  { %v232_v22 = vrot.slane %v231_v20, 4  ;;  %v387_v12 = vadd.f32 %v385_v24, %v384_v30  ;;  %v436_v21 = vadd.f32 %v433_v16, %v418_v53  ;;  %v386_v32 = vmul.f32 %v382_v2, %v368_v34 }
 0x111   :  { %v431_v11 = vpop.permute.xlu1 %430  ;;  %v722_v8 = vsub.f32 %v721_v37, %v1056_v39  ;;  %v471_v30 = vmul.f32 %v1136_v14, %v1098_v54  ;;  %v499_v37 = vpop.permute.xlu0 %498 }
 0x112   :  { %v233_v38 = vadd.f32 %v232_v22, %v231_v20  ;;  %v388_v33 = vadd.f32 %v387_v12, %v386_v32  ;;  %v435_v47 = vmul.f32 %v431_v11, %v1072_v45 }
 0x113   :  { %v723_v12 = vsub.f32 %v722_v8, %v1068_v44 }
 0x114   :  { %v234_v58 = vrot.slane %v233_v38, 2  ;;  %v389_v25 = vrot.slane %v388_v33, 4  ;;  %v438_v24 = vadd.f32 %v435_v47, %v420_v60 }
 0x115   :  { %v724_v11 = vsub.f32 %v723_v12, %v1078_v46  ;;  %v727_v46 = vadd.f32 %v1068_v44, %v1056_v39 }
 0x116   :  { %v235_v56 = vadd.f32 %v234_v58, %v233_v38  ;;  %v441_v52 = vpop.permute.xlu1 %440  ;;  %v390_v55 = vadd.f32 %v389_v25, %v388_v33  ;;  %v610_v33 = vmul.f32 %v1148_v59, %v1086_v49 }
 0x117   :  { %v451_v62 = vmul.f32 %v441_v52, %v1086_v49  ;;  %v725_v25 = vsub.f32 %v724_v11, %v1093_v51  ;;  %v731_v52 = vstv %s31_s2 }
 0x118   :  { %v236_v15 = vrot.slane %v235_v56, 1  ;;  %v391_v40 = vrot.slane %v390_v55, 2  ;;  %v732_v59 = vmul.f32 %v731_v52, %v1063_v43 }
 0x119   :  { %v454_v31 = vadd.f32 %v451_v62, %v436_v21 }
 0x11a   :  { %v237_v1 = vadd.f32 %v236_v15, %v235_v56  ;;  %v392_v2 = vadd.f32 %v391_v40, %v390_v55 }
 0x11b   :  { %v1227_v3 = vpop.permute.xlu1 %562  ;;  %v1229_v4 = vadd.f32 %v469_v35, %v454_v31  ;;  %v734_v35 = vstv %s33_s26 }
 0x11c   :  { %v239_v26 = vadd.f32 %v238_v9, %v237_v1  ;;  %v393_v6 = vrot.slane %v392_v2, 1  ;;  %v729_v9 = vstv %s756_s25  ;;  %v1259_v40 = vmul.f32 %v734_v35, %v1056_v39 }
 0x11e   :  { %v240_v23 = vsub.f32 0.0, %v239_v26  ;;  %v394_v36 = vadd.f32 %v393_v6, %v392_v2  ;;  %v736_v6 = vsub.f32 %v732_v59, %v1259_v40 }
 0x11f   :  { %v1231_v27 = vpop.permute.xlu1 %567 }
 0x120   :  { %v241_v13 = vmul.f32 1.442695, %v240_v23  ;;  %v396_v28 = vadd.f32 %v395_v41, %v394_v36 }
 0x122   :  { %827 = vpow2.f32 %v241_v13  ;;  %v397_v0 = vsub.f32 0.0, %v396_v28 }
 0x124   :  { %v1233_v7 = vpop.permute.xlu1 %583  ;;  %v398_v63 = vmul.f32 1.442695, %v397_v0 }
 0x126   :  { %829 = vpow2.f32 %v398_v63 }
 0x129   :  { %v449_v53 = vpop.permute.xlu1 %448 }
 0x12a   :  { %v453_v50 = vmul.f32 %v449_v53, %v1086_v49  ;;  %v575_v53 = vmul.f32 %v1227_v3, %v1083_v48 }
 0x12c   :  { %v828_v20 = vpop.eup %827  ;;  %v456_v16 = vadd.f32 %v453_v50, %v438_v24  ;;  %v590_v24 = vmul.f32 %v1116_v5, %v1072_v45  ;;  %v591_v5 = vmul.f32 %v1233_v7, %v1072_v45 }
 0x12d   :  { %v243_v22 = vadd.f32 1.0, %v828_v20 }
 0x12e   :  { %v463_v42 = vpop.permute.xlu1 %462  ;;  %v474_v34 = vadd.f32 %v471_v30, %v456_v16  ;;  %v593_v30 = vadd.f32 %v590_v24, %v575_v53 }
 0x12f   :  { %831 = vrcp.f32 %v243_v22  ;;  %v470_v28 = vmul.f32 %v463_v42, %v1098_v54 }
 0x130   :  { %v1246_v21 = vadd.f32 %v489_v17, %v474_v34  ;;  %v830_v32 = vpop.eup %829 }
 0x131   :  { %v400_v38 = vadd.f32 1.0, %v830_v32 }
 0x133   :  { %v573_v14 = vpop.permute.xlu1 %572  ;;  %833 = vrcp.f32 %v400_v38 }
 0x134   :  { %v577_v58 = vmul.f32 %v573_v14, %v1083_v48 }
 0x136   :  { %v595_v56 = vadd.f32 %v592_v29, %v577_v58  ;;  %v576_v29 = vmul.f32 %v1231_v27, %v1083_v48  ;;  %v652_v58 = vpop.permute.xlu0 %651 }
 0x138   :  { %v598_v55 = vpop.permute.xlu1 %597  ;;  %v613_v62 = vadd.f32 %v610_v33, %v595_v56 }
 0x139   :  { %v832_v15 = vpop.eup %831  ;;  %v608_v50 = vmul.f32 %v598_v55, %v1086_v49 }
 0x13a   :  { %v726_v18 = vmul.f32 %v832_v15, %v725_v25 }
 0x13b   :  { %v611_v22 = vadd.f32 %v608_v50, %v593_v30 }
 0x13c   :  { %v728_v31 = vmul.f32 %v727_v46, %v726_v18  ;;  %v602_v1 = vpop.permute.xlu1 %601  ;;  %v594_v46 = vadd.f32 %v591_v5, %v576_v29 }
 0x13d   :  { %v834_v2 = vpop.eup %833  ;;  %v609_v33 = vmul.f32 %v602_v1, %v1086_v49 }
 0x13e   :  { %v730_v51 = vmul.f32 %v729_v9, %v728_v31  ;;  %v717_v26 = vmul.f32 %v834_v2, %v834_v2  ;;  %v645_v31 = vmul.f32 %v1187_v61, %v1104_v57 }
 0x13f   :  { %v612_v7 = vadd.f32 %v609_v33, %v594_v46 }
 0x140   :  { %v733_v23 = vsub.f32 %v730_v51, %v732_v59  ;;  %v1263_v41 = vmul.f32 %v717_v26, %v1056_v39  ;;  %v473_v39 = vadd.f32 %v470_v28, %v1220_v10  ;;  %v660_v59 = vpop.permute.xlu0 %659 }
 0x141   :  { %v477_v36 = vpop.permute.xlu1 %476 }
 0x142   :  { %744 = vst [vmem:[%s1312_s4] sm:$0x1] %v733_v23  ;;  %v738_v43 = vsub.f32 %v736_v6, %v1263_v41  ;;  %v487_v16 = vmul.f32 %v477_v36, %v1104_v57 }
 0x144   :  { %745 = vst [vmem:[%s1312_s4 + $0x1] sm:$0x1] %v738_v43  ;;  %v490_v3 = vadd.f32 %v487_v16, %v1229_v4 }
 0x145   :  { %v481_v13 = vpop.permute.xlu1 %480 }
 0x146   :  { %v488_v19 = vmul.f32 %v481_v13, %v1104_v57 }
 0x148   :  { %v491_v63 = vadd.f32 %v488_v19, %v473_v39  ;;  %v534_v19 = vpop.permute.xlu0 %533 }
 0x14a   :  { %v616_v0 = vpop.permute.xlu1 %615  ;;  %v506_v60 = vadd.f32 %v499_v37, %v491_v63 }
 0x14b   :  { %v626_v17 = vmul.f32 %v616_v0, %v1098_v54 }
 0x14c   :  { %v512_v20 = vmin.f32 %v506_v60, 0.0  ;;  %vm509_vm6 = vcmp.gt.f32.partialorder %v506_v60, 0.0 }
 0x14d   :  { %v629_v34 = vadd.f32 %v626_v17, %v611_v22 }
 0x14e   :  { %v620_v47 = vpop.permute.xlu1 %619  ;;  %v516_v42 = vmul.f32 1.442695, %v512_v20 }
 0x14f   :  { %v627_v4 = vmul.f32 %v620_v47, %v1098_v54 }
 0x150   :  { %835 = vpow2.f32 %v516_v42 }
 0x151   :  { %v630_v9 = vadd.f32 %v627_v4, %v612_v7 }
 0x152   :  { %v624_v8 = vpop.permute.xlu1 %623 }
 0x153   :  { %v628_v14 = vmul.f32 %v624_v8, %v1098_v54 }
 0x155   :  { %v631_v55 = vadd.f32 %v628_v14, %v613_v62  ;;  %v648_v62 = vadd.f32 %v645_v31, %v630_v9 }
 0x157   :  { %v634_v10 = vpop.permute.xlu1 %633 }
 0x158   :  { %v644_v12 = vmul.f32 %v634_v10, %v1104_v57 }
 0x15a   :  { %v647_v32 = vadd.f32 %v644_v12, %v629_v34  ;;  %v836_v49 = vpop.eup %835 }
 0x15b   :  { %v768_v26 = vadd.f32 -1.0, %v836_v49  ;;  %v709_v49 = vstv %s760_s6 }
 0x15c   :  { %v495_v11 = vpop.permute.xlu1 %494  ;;  %v662_v56 = vadd.f32 %v652_v58, %v647_v32 }
 0x15d   :  { %v505_v38 = vadd.f32 %v495_v11, %v490_v3  ;;  %v524_v0 = vsel %vm509_vm6, %v506_v60, %v768_v26  ;;  %v691_v3 = vpop.permute.xlu0 %690 }
 0x15e   :  { %v668_v15 = vmin.f32 %v662_v56, 0.0  ;;  %v542_v63 = vmul.f32 %v534_v19, %v524_v0  ;;  %vm665_vm9 = vcmp.gt.f32.partialorder %v662_v56, 0.0 }
 0x15f   :  { %v511_v25 = vmin.f32 %v505_v38, 0.0  ;;  %vm508_vm7 = vcmp.gt.f32.partialorder %v505_v38, 0.0 }
 0x160   :  { %v671_v2 = vmul.f32 1.442695, %v668_v15 }
 0x161   :  { %v514_v52 = vmul.f32 1.442695, %v511_v25  ;;  %v642_v35 = vpop.permute.xlu1 %641 }
 0x162   :  { %v646_v45 = vmul.f32 %v642_v35, %v1104_v57 }
 0x163   :  { %837 = vpow2.f32 %v514_v52 }
 0x164   :  { %v649_v18 = vadd.f32 %v646_v45, %v631_v55  ;;  %839 = vpow2.f32 %v671_v2 }
 0x166   :  { %v664_v48 = vadd.f32 %v660_v59, %v649_v18  ;;  %v503_v27 = vpop.permute.xlu1 %502 }
 0x167   :  { %v507_v1 = vadd.f32 %v503_v27, %v1246_v21 }
 0x168   :  { %v670_v54 = vmin.f32 %v664_v48, 0.0  ;;  %vm667_vm11 = vcmp.gt.f32.partialorder %v664_v48, 0.0 }
 0x169   :  { %v513_v51 = vmin.f32 %v507_v1, 0.0  ;;  %vm510_vm8 = vcmp.gt.f32.partialorder %v507_v1, 0.0 }
 0x16a   :  { %v656_v6 = vpop.permute.xlu1 %655  ;;  %v675_v43 = vmul.f32 1.442695, %v670_v54 }
 0x16b   :  { %v518_v23 = vmul.f32 1.442695, %v513_v51  ;;  %v663_v36 = vadd.f32 %v656_v6, %v648_v62 }
 0x16d   :  { %v838_v13 = vpop.eup %837  ;;  %841 = vpow2.f32 %v518_v23  ;;  %v669_v28 = vmin.f32 %v663_v36, 0.0  ;;  %vm666_vm10 = vcmp.gt.f32.partialorder %v663_v36, 0.0 }
 0x16e   :  { %v767_v39 = vadd.f32 -1.0, %v838_v13  ;;  %843 = vpow2.f32 %v675_v43  ;;  %v840_v8 = vpop.eup %839 }
 0x16f   :  { %v673_v57 = vmul.f32 1.442695, %v669_v28  ;;  %v529_v61 = vpop.permute.xlu1 %528  ;;  %v770_v16 = vadd.f32 -1.0, %v840_v8 }
 0x170   :  { %v523_v21 = vsel %vm508_vm7, %v505_v38, %v767_v39 }
 0x171   :  { %845 = vpow2.f32 %v673_v57  ;;  %v541_v37 = vmul.f32 %v529_v61, %v523_v21  ;;  %v680_v34 = vsel %vm665_vm9, %v662_v56, %v770_v16  ;;  %v552_v56 = vstv %s759_s5 }
 0x173   :  { %v544_v47 = vadd.f32 %v542_v63, %v541_v37  ;;  %v539_v53 = vpop.permute.xlu1 %538 }
 0x177   :  { %v842_v24 = vpop.eup %841  ;;  %v686_v20 = vpop.permute.xlu1 %685 }
 0x178   :  { %v769_v50 = vadd.f32 -1.0, %v842_v24  ;;  %v844_v30 = vpop.eup %843  ;;  %v698_v38 = vmul.f32 %v686_v20, %v680_v34 }
 0x179   :  { %v772_v12 = vadd.f32 -1.0, %v844_v30 }
 0x17a   :  { %v525_v17 = vsel %vm510_vm8, %v507_v1, %v769_v50 }
 0x17b   :  { %v846_v60 = vpop.eup %845  ;;  %v543_v10 = vmul.f32 %v539_v53, %v525_v17  ;;  %v696_v11 = vpop.permute.xlu1 %695  ;;  %v682_v29 = vsel %vm667_vm11, %v664_v48, %v772_v12 }
 0x17c   :  { %v771_v22 = vadd.f32 -1.0, %v846_v60  ;;  %v700_v25 = vmul.f32 %v696_v11, %v682_v29 }
 0x17d   :  { %v545_v42 = vadd.f32 %v544_v47, %v543_v10 }
 0x17e   :  { %v681_v32 = vsel %vm666_vm10, %v663_v36, %v771_v22 }
 0x17f   :  { %v546_v5 = vrot.slane %v545_v42, 4  ;;  %v699_v14 = vmul.f32 %v691_v3, %v681_v32 }
 0x181   :  { %v547_v33 = vadd.f32 %v546_v5, %v545_v42  ;;  %v701_v58 = vadd.f32 %v699_v14, %v698_v38 }
 0x183   :  { %v548_v46 = vrot.slane %v547_v33, 2  ;;  %v702_v4 = vadd.f32 %v701_v58, %v700_v25 }
 0x185   :  { %v549_v52 = vadd.f32 %v548_v46, %v547_v33  ;;  %v703_v35 = vrot.slane %v702_v4, 4 }
 0x187   :  { %v550_v55 = vrot.slane %v549_v52, 1  ;;  %v704_v45 = vadd.f32 %v703_v35, %v702_v4 }
 0x189   :  { %v551_v7 = vadd.f32 %v550_v55, %v549_v52  ;;  %v705_v15 = vrot.slane %v704_v45, 2 }
 0x18b   :  { %v553_v18 = vadd.f32 %v552_v56, %v551_v7  ;;  %v706_v9 = vadd.f32 %v705_v15, %v704_v45 }
 0x18d   :  { %v554_v59 = vsub.f32 0.0, %v553_v18  ;;  %v707_v27 = vrot.slane %v706_v9, 1 }
 0x18f   :  { %v555_v31 = vmul.f32 1.442695, %v554_v59  ;;  %v708_v48 = vadd.f32 %v707_v27, %v706_v9 }
 0x191   :  { %847 = vpow2.f32 %v555_v31  ;;  %v710_v1 = vadd.f32 %v709_v49, %v708_v48 }
 0x193   :  { %v711_v54 = vsub.f32 0.0, %v710_v1 }
 0x195   :  { %v712_v2 = vmul.f32 1.442695, %v711_v54 }
 0x197   :  { %849 = vpow2.f32 %v712_v2 }
 0x19b   :  { %v848_v51 = vpop.eup %847 }
 0x19c   :  { %v557_v62 = vadd.f32 1.0, %v848_v51 }
 0x19e   :  { %851 = vrcp.f32 %v557_v62 }
 0x1a1   :  { %v850_v26 = vpop.eup %849 }
 0x1a2   :  { %v714_v6 = vadd.f32 1.0, %v850_v26 }
 0x1a4   :  { %853 = vrcp.f32 %v714_v6 }
 0x1a8   :  { %v852_v23 = vpop.eup %851 }
 0x1a9   :  { %v718_v36 = vmul.f32 %v852_v23, %v852_v23 }
 0x1ab   :  { %v739_v43 = vmul.f32 %v718_v36, %v1068_v44 }
 0x1ad   :  { %v743_v13 = vadd.f32 %v739_v43, %v1263_v41  ;;  %v740_v0 = vsub.f32 %v1259_v40, %v739_v43 }
 0x1ae   :  { %v854_v28 = vpop.eup %853 }
 0x1af   :  { %747 = vst [vmem:[%s1312_s4 + $0x3] sm:$0x1] %v743_v13  ;;  %v719_v19 = vmul.f32 %v854_v28, %v854_v28 }
 0x1b1   :  { %v741_v39 = vmul.f32 %v719_v19, %v1068_v44 }
 0x1b3   :  { %v742_v57 = vsub.f32 %v740_v0, %v741_v39  ;;  %748 = vst [vmem:[%s1312_s4 + $0x4] sm:$0x1] %v741_v39 }
 0x1b5   :  { %746 = vst [vmem:[%s1312_s4 + $0x2] sm:$0x1] %v742_v57 }
 0x1b6   :  { %753 = vsyncpa [#allocation3], 1 }

</bundles_post_ra>
